<compile_context>
chip_gen: v5e
topology: v5e:2x2
jax: 0.10.0
libtpu: 0.0.40
codegen_flags: <defaults>
</compile_context>

<pallas_src>
import jax
import jax.numpy as jnp
from jax import lax
from jax.experimental import pallas as pl
from jax.experimental.pallas import tpu as pltpu


def _gelu(x):
    # tanh-approximate GELU: single EUP op per element instead of an erf
    # polynomial on the VALU.  Numerics within the 2e-2 tolerance.
    return jax.nn.gelu(x, approximate=True)


def _cond_block_kernel(t_ref, c_ref, x_ref,
                       wts_ref, wtsh_ref, wcs_ref, wcsh_ref,
                       bs_ref, bsh_ref,
                       wp_ref, bp_ref, wm_ref, bm_ref,
                       o_ref):
    f32 = jnp.float32

    # --- scale / shift branch ------------------------------------------------
    # gelu(concat([temb, cemb])) == concat(gelu(temb), gelu(cemb)); splitting
    # w_ss avoids the host concat and any lane-dim slice of a (TB, 2D) slab.
    gt = _gelu(t_ref[...].astype(f32)).astype(jnp.bfloat16)
    gc = _gelu(c_ref[...].astype(f32)).astype(jnp.bfloat16)
    scale = (jnp.dot(gt, wts_ref[...], preferred_element_type=f32)
             + jnp.dot(gc, wcs_ref[...], preferred_element_type=f32)
             + bs_ref[...])
    shift = (jnp.dot(gt, wtsh_ref[...], preferred_element_type=f32)
             + jnp.dot(gc, wcsh_ref[...], preferred_element_type=f32)
             + bsh_ref[...])

    # --- proj + InstanceNorm1d (per-row norm over the feature dim) -----------
    xb = x_ref[...].astype(jnp.bfloat16)
    xp = jnp.dot(xb, wp_ref[...], preferred_element_type=f32) + bp_ref[...]
    mean = jnp.mean(xp, axis=-1, keepdims=True)
    centered = xp - mean
    var = jnp.mean(centered * centered, axis=-1, keepdims=True)   # biased var
    xn = centered * lax.rsqrt(var + 1e-5)

    # --- modulation + mlp (GELU -> Linear) + final GELU -----------------------
    y = _gelu(scale * xn + shift).astype(jnp.bfloat16)
    y = jnp.dot(y, wm_ref[...], preferred_element_type=f32) + bm_ref[...]
    o_ref[...] = _gelu(y).astype(o_ref.dtype)


def _round_up(x, m):
    return ((x + m - 1) // m) * m


def conditioning_block(xemb, cemb, temb, params, *, batch_tile=256):
    """xemb, cemb, temb: (B, D) float32. Returns (B, D) float32."""
    B, D = xemb.shape
    bf16 = jnp.bfloat16

    # Weight prep: (in, out) layout, bf16 weights, f32 biases; split w_ss into
    # quadrants so scale/shift come out as separate lane-dense (TB, D) results.
    w_ss_t = params["w_ss"].T.astype(bf16)             # (2D, 2D)
    w_ts, w_tsh = w_ss_t[:D, :D], w_ss_t[:D, D:]       # temb -> scale / shift
    w_cs, w_csh = w_ss_t[D:, :D], w_ss_t[D:, D:]       # cemb -> scale / shift
    b_s = params["b_ss"][None, :D].astype(jnp.float32)
    b_sh = params["b_ss"][None, D:].astype(jnp.float32)
    w_p = params["w_proj"].T.astype(bf16)
    b_p = params["b_proj"][None, :].astype(jnp.float32)
    w_m = params["w_mlp"].T.astype(bf16)
    b_m = params["b_mlp"][None, :].astype(jnp.float32)

    # Batch tiling: TB multiple of 8 (f32 sublane); pad batch if needed.
    TB = batch_tile if B >= batch_tile else _round_up(B, 8)
    Bp = _round_up(B, TB)
    if Bp != B:
        pad = ((0, Bp - B), (0, 0))
        xemb_p = jnp.pad(xemb, pad)
        cemb_p = jnp.pad(cemb, pad)
        temb_p = jnp.pad(temb, pad)
    else:
        xemb_p, cemb_p, temb_p = xemb, cemb, temb

    act_spec = pl.BlockSpec((TB, D), lambda i: (i, 0))          # pipelined
    res_spec = lambda shape: pl.BlockSpec(shape, lambda i: (0, 0))  # resident

    # VMEM budget (weights + double-buffered activation tiles) with headroom.
    w_bytes = 6 * D * D * 2 + 4 * D * 4
    act_bytes = 4 * 2 * TB * D * 4
    vmem_limit = int(min(64 * 2**20, max(4 * (w_bytes + act_bytes), 16 * 2**20)))

    cost = pl.CostEstimate(
        flops=12 * B * D * D,            # 8BD^2 (scale_shift) + 2BD^2 + 2BD^2
        transcendentals=4 * B * D,       # 3 GELUs, one over (B, 2D)
        bytes_accessed=4 * B * D * 4 + w_bytes,
    )

    out = pl.pallas_call(
        _cond_block_kernel,
        out_shape=jax.ShapeDtypeStruct((Bp, D), xemb.dtype),
        grid=(Bp // TB,),
        in_specs=[
            act_spec, act_spec, act_spec,            # temb, cemb, xemb
            res_spec((D, D)), res_spec((D, D)),      # w_t->scale, w_t->shift
            res_spec((D, D)), res_spec((D, D)),      # w_c->scale, w_c->shift
            res_spec((1, D)), res_spec((1, D)),      # b_scale, b_shift
            res_spec((D, D)), res_spec((1, D)),      # w_proj, b_proj
            res_spec((D, D)), res_spec((1, D)),      # w_mlp, b_mlp
        ],
        out_specs=act_spec,
        compiler_params=pltpu.CompilerParams(
            dimension_semantics=("parallel",),       # megacore split on v7x
            vmem_limit_bytes=vmem_limit,
        ),
        cost_estimate=cost,
    )(temb_p, cemb_p, xemb_p,
      w_ts, w_tsh, w_cs, w_csh, b_s, b_sh, w_p, b_p, w_m, b_m)
    return out[:B]


def _reference(xemb, cemb, temb, params):
    # Exact-erf GELU, f32 — matches PyTorch nn.GELU() default.
    D = xemb.shape[1]
    gelu = lambda v: 0.5 * v * (1.0 + lax.erf(v * 0.7071067811865476))
    tc = jnp.concatenate([temb, cemb], axis=-1)
    ss = gelu(tc) @ params["w_ss"].T + params["b_ss"]
    scale, shift = ss[:, :D], ss[:, D:]
    xp = xemb @ params["w_proj"].T + params["b_proj"]
    mean = jnp.mean(xp, axis=-1, keepdims=True)
    var = jnp.mean((xp - mean) ** 2, axis=-1, keepdims=True)
    xn = (xp - mean) / jnp.sqrt(var + 1e-5)
    y = gelu(scale * xn + shift) @ params["w_mlp"].T + params["b_mlp"]
    return gelu(y)


def _init_params(key, emb_dim):
    """Deterministic init matching the PyTorch Linear shapes (out, in)."""
    ks = jax.random.split(key, 6)

    def linear(kw, kb, fan_in, fan_out):
        bound = 1.0 / jnp.sqrt(fan_in)
        w = jax.random.uniform(kw, (fan_out, fan_in), jnp.float32, -bound, bound)
        b = jax.random.uniform(kb, (fan_out,), jnp.float32, -bound, bound)
        return w, b

    w_proj, b_proj = linear(ks[0], ks[1], emb_dim, emb_dim)
    w_ss, b_ss = linear(ks[2], ks[3], 2 * emb_dim, 2 * emb_dim)
    w_mlp, b_mlp = linear(ks[4], ks[5], emb_dim, emb_dim)
    return {
        "w_proj": w_proj, "b_proj": b_proj,
        "w_ss": w_ss, "b_ss": b_ss,
        "w_mlp": w_mlp, "b_mlp": b_mlp,
    }


if __name__ == "__main__":
    B, EMB = 4, 128  # module default emb_dim=128

    key = jax.random.PRNGKey(0)
    k_x, k_c, k_t, k_p = jax.random.split(key, 4)
    xemb = jax.random.normal(k_x, (B, EMB), jnp.float32)
    cemb = jax.random.normal(k_c, (B, EMB), jnp.float32)
    temb = jax.random.normal(k_t, (B, EMB), jnp.float32)
    params = _init_params(k_p, EMB)

    fn = jax.jit(conditioning_block)
    out = jax.block_until_ready(fn(xemb, cemb, temb, params))

    ref = jax.block_until_ready(_reference(xemb, cemb, temb, params))
    assert out.shape == (B, EMB)
    assert jnp.allclose(out, ref, rtol=2e-2, atol=2e-2), "mismatch vs JAX reference"

    print("KERNEL_OK")
</pallas_src>

<mosaic_0001>
module attributes {stable_mosaic.version = 11 : i64} {
  func.func @_cond_block_kernel(%arg0: i32, %arg1: memref<8x128xf32, #tpu.memory_space<vmem>>, %arg2: memref<8x128xf32, #tpu.memory_space<vmem>>, %arg3: memref<8x128xf32, #tpu.memory_space<vmem>>, %arg4: memref<128x128xbf16, #tpu.memory_space<vmem>>, %arg5: memref<128x128xbf16, #tpu.memory_space<vmem>>, %arg6: memref<128x128xbf16, #tpu.memory_space<vmem>>, %arg7: memref<128x128xbf16, #tpu.memory_space<vmem>>, %arg8: memref<1x128xf32, #tpu.memory_space<vmem>>, %arg9: memref<1x128xf32, #tpu.memory_space<vmem>>, %arg10: memref<128x128xbf16, #tpu.memory_space<vmem>>, %arg11: memref<1x128xf32, #tpu.memory_space<vmem>>, %arg12: memref<128x128xbf16, #tpu.memory_space<vmem>>, %arg13: memref<1x128xf32, #tpu.memory_space<vmem>>, %arg14: memref<8x128xf32, #tpu.memory_space<vmem>>) attributes {dimension_semantics = [#tpu.dimension_semantics<parallel>], iteration_bounds = array<i64: 1>, scalar_prefetch = 0 : i64, scratch_operands = 0 : i64, tpu.core_type = #tpu.core_type<tc>, window_params = [{transform_indices = @transform_0, window_bounds = array<i64: 8, 128>}, {transform_indices = @transform_1, window_bounds = array<i64: 8, 128>}, {transform_indices = @transform_2, window_bounds = array<i64: 8, 128>}, {pipeline_mode = #tpu.pipeline_mode<synchronous>, transform_indices = @transform_3, window_bounds = array<i64: 128, 128>}, {pipeline_mode = #tpu.pipeline_mode<synchronous>, transform_indices = @transform_4, window_bounds = array<i64: 128, 128>}, {pipeline_mode = #tpu.pipeline_mode<synchronous>, transform_indices = @transform_5, window_bounds = array<i64: 128, 128>}, {pipeline_mode = #tpu.pipeline_mode<synchronous>, transform_indices = @transform_6, window_bounds = array<i64: 128, 128>}, {pipeline_mode = #tpu.pipeline_mode<synchronous>, transform_indices = @transform_7, window_bounds = array<i64: 1, 128>}, {pipeline_mode = #tpu.pipeline_mode<synchronous>, transform_indices = @transform_8, window_bounds = array<i64: 1, 128>}, {pipeline_mode = #tpu.pipeline_mode<synchronous>, transform_indices = @transform_9, window_bounds = array<i64: 128, 128>}, {pipeline_mode = #tpu.pipeline_mode<synchronous>, transform_indices = @transform_10, window_bounds = array<i64: 1, 128>}, {pipeline_mode = #tpu.pipeline_mode<synchronous>, transform_indices = @transform_11, window_bounds = array<i64: 128, 128>}, {pipeline_mode = #tpu.pipeline_mode<synchronous>, transform_indices = @transform_12, window_bounds = array<i64: 1, 128>}, {transform_indices = @transform_13, window_bounds = array<i64: 8, 128>}]} {
    %c0 = arith.constant 0 : index
    %c0_0 = arith.constant 0 : index
    %0 = vector.load %arg1[%c0, %c0_0] : memref<8x128xf32, #tpu.memory_space<vmem>>, vector<8x128xf32>
    %1 = arith.mulf %0, %0 : vector<8x128xf32>
    %2 = arith.mulf %0, %1 : vector<8x128xf32>
    %cst = arith.constant 4.471500e-02 : f32
    %3 = vector.broadcast %cst : f32 to vector<8x128xf32>
    %4 = arith.mulf %3, %2 : vector<8x128xf32>
    %5 = arith.addf %0, %4 : vector<8x128xf32>
    %cst_1 = arith.constant 0.797884583 : f32
    %6 = vector.broadcast %cst_1 : f32 to vector<8x128xf32>
    %7 = arith.mulf %6, %5 : vector<8x128xf32>
    %8 = math.tanh %7 : vector<8x128xf32>
    %cst_2 = arith.constant 1.000000e+00 : f32
    %9 = vector.broadcast %cst_2 : f32 to vector<8x128xf32>
    %10 = arith.addf %9, %8 : vector<8x128xf32>
    %cst_3 = arith.constant 5.000000e-01 : f32
    %11 = vector.broadcast %cst_3 : f32 to vector<8x128xf32>
    %12 = arith.mulf %11, %10 : vector<8x128xf32>
    %13 = arith.mulf %0, %12 : vector<8x128xf32>
    %14 = arith.truncf %13 : vector<8x128xf32> to vector<8x128xbf16>
    %c0_4 = arith.constant 0 : index
    %c0_5 = arith.constant 0 : index
    %15 = vector.load %arg2[%c0_4, %c0_5] : memref<8x128xf32, #tpu.memory_space<vmem>>, vector<8x128xf32>
    %16 = arith.mulf %15, %15 : vector<8x128xf32>
    %17 = arith.mulf %15, %16 : vector<8x128xf32>
    %cst_6 = arith.constant 4.471500e-02 : f32
    %18 = vector.broadcast %cst_6 : f32 to vector<8x128xf32>
    %19 = arith.mulf %18, %17 : vector<8x128xf32>
    %20 = arith.addf %15, %19 : vector<8x128xf32>
    %cst_7 = arith.constant 0.797884583 : f32
    %21 = vector.broadcast %cst_7 : f32 to vector<8x128xf32>
    %22 = arith.mulf %21, %20 : vector<8x128xf32>
    %23 = math.tanh %22 : vector<8x128xf32>
    %cst_8 = arith.constant 1.000000e+00 : f32
    %24 = vector.broadcast %cst_8 : f32 to vector<8x128xf32>
    %25 = arith.addf %24, %23 : vector<8x128xf32>
    %cst_9 = arith.constant 5.000000e-01 : f32
    %26 = vector.broadcast %cst_9 : f32 to vector<8x128xf32>
    %27 = arith.mulf %26, %25 : vector<8x128xf32>
    %28 = arith.mulf %15, %27 : vector<8x128xf32>
    %29 = arith.truncf %28 : vector<8x128xf32> to vector<8x128xbf16>
    %c0_10 = arith.constant 0 : index
    %c0_11 = arith.constant 0 : index
    %30 = vector.load %arg4[%c0_10, %c0_11] : memref<128x128xbf16, #tpu.memory_space<vmem>>, vector<128x128xbf16>
    %cst_12 = arith.constant dense<0.000000e+00> : vector<8x128xf32>
    %31 = tpu.matmul %14, %30, %cst_12 {dimension_numbers = #tpu.dot_dimension_numbers<[1], [0], [0], [1], [0, 0, 1, 1], [], []>} : vector<8x128xbf16>, vector<128x128xbf16>, vector<8x128xf32> -> vector<8x128xf32>
    %c0_13 = arith.constant 0 : index
    %c0_14 = arith.constant 0 : index
    %32 = vector.load %arg6[%c0_13, %c0_14] : memref<128x128xbf16, #tpu.memory_space<vmem>>, vector<128x128xbf16>
    %cst_15 = arith.constant dense<0.000000e+00> : vector<8x128xf32>
    %33 = tpu.matmul %29, %32, %cst_15 {dimension_numbers = #tpu.dot_dimension_numbers<[1], [0], [0], [1], [0, 0, 1, 1], [], []>} : vector<8x128xbf16>, vector<128x128xbf16>, vector<8x128xf32> -> vector<8x128xf32>
    %34 = arith.addf %31, %33 : vector<8x128xf32>
    %c0_16 = arith.constant 0 : index
    %c0_17 = arith.constant 0 : index
    %35 = vector.load %arg8[%c0_16, %c0_17] : memref<1x128xf32, #tpu.memory_space<vmem>>, vector<1x128xf32>
    %36 = vector.broadcast %35 : vector<1x128xf32> to vector<8x128xf32>
    %37 = arith.addf %34, %36 : vector<8x128xf32>
    %c0_18 = arith.constant 0 : index
    %c0_19 = arith.constant 0 : index
    %38 = vector.load %arg5[%c0_18, %c0_19] : memref<128x128xbf16, #tpu.memory_space<vmem>>, vector<128x128xbf16>
    %cst_20 = arith.constant dense<0.000000e+00> : vector<8x128xf32>
    %39 = tpu.matmul %14, %38, %cst_20 {dimension_numbers = #tpu.dot_dimension_numbers<[1], [0], [0], [1], [0, 0, 1, 1], [], []>} : vector<8x128xbf16>, vector<128x128xbf16>, vector<8x128xf32> -> vector<8x128xf32>
    %c0_21 = arith.constant 0 : index
    %c0_22 = arith.constant 0 : index
    %40 = vector.load %arg7[%c0_21, %c0_22] : memref<128x128xbf16, #tpu.memory_space<vmem>>, vector<128x128xbf16>
    %cst_23 = arith.constant dense<0.000000e+00> : vector<8x128xf32>
    %41 = tpu.matmul %29, %40, %cst_23 {dimension_numbers = #tpu.dot_dimension_numbers<[1], [0], [0], [1], [0, 0, 1, 1], [], []>} : vector<8x128xbf16>, vector<128x128xbf16>, vector<8x128xf32> -> vector<8x128xf32>
    %42 = arith.addf %39, %41 : vector<8x128xf32>
    %c0_24 = arith.constant 0 : index
    %c0_25 = arith.constant 0 : index
    %43 = vector.load %arg9[%c0_24, %c0_25] : memref<1x128xf32, #tpu.memory_space<vmem>>, vector<1x128xf32>
    %44 = vector.broadcast %43 : vector<1x128xf32> to vector<8x128xf32>
    %45 = arith.addf %42, %44 : vector<8x128xf32>
    %c0_26 = arith.constant 0 : index
    %c0_27 = arith.constant 0 : index
    %46 = vector.load %arg3[%c0_26, %c0_27] : memref<8x128xf32, #tpu.memory_space<vmem>>, vector<8x128xf32>
    %47 = arith.truncf %46 : vector<8x128xf32> to vector<8x128xbf16>
    %c0_28 = arith.constant 0 : index
    %c0_29 = arith.constant 0 : index
    %48 = vector.load %arg10[%c0_28, %c0_29] : memref<128x128xbf16, #tpu.memory_space<vmem>>, vector<128x128xbf16>
    %cst_30 = arith.constant dense<0.000000e+00> : vector<8x128xf32>
    %49 = tpu.matmul %47, %48, %cst_30 {dimension_numbers = #tpu.dot_dimension_numbers<[1], [0], [0], [1], [0, 0, 1, 1], [], []>} : vector<8x128xbf16>, vector<128x128xbf16>, vector<8x128xf32> -> vector<8x128xf32>
    %c0_31 = arith.constant 0 : index
    %c0_32 = arith.constant 0 : index
    %50 = vector.load %arg11[%c0_31, %c0_32] : memref<1x128xf32, #tpu.memory_space<vmem>>, vector<1x128xf32>
    %51 = vector.broadcast %50 : vector<1x128xf32> to vector<8x128xf32>
    %52 = arith.addf %49, %51 : vector<8x128xf32>
    %cst_33 = arith.constant dense<0.000000e+00> : vector<8xf32>
    %53 = vector.multi_reduction <add>, %52, %cst_33 [1] : vector<8x128xf32> to vector<8xf32>
    %54 = vector.shape_cast %53 : vector<8xf32> to vector<8x1xf32>
    %cst_34 = arith.constant 1.280000e+02 : f32
    %55 = vector.broadcast %cst_34 : f32 to vector<8x1xf32>
    %56 = arith.divf %54, %55 : vector<8x1xf32>
    %57 = vector.broadcast %56 : vector<8x1xf32> to vector<8x128xf32>
    %58 = arith.subf %52, %57 : vector<8x128xf32>
    %59 = arith.mulf %58, %58 : vector<8x128xf32>
    %cst_35 = arith.constant dense<0.000000e+00> : vector<8xf32>
    %60 = vector.multi_reduction <add>, %59, %cst_35 [1] : vector<8x128xf32> to vector<8xf32>
    %61 = vector.shape_cast %60 : vector<8xf32> to vector<8x1xf32>
    %cst_36 = arith.constant 1.280000e+02 : f32
    %62 = vector.broadcast %cst_36 : f32 to vector<8x1xf32>
    %63 = arith.divf %61, %62 : vector<8x1xf32>
    %cst_37 = arith.constant 9.99999974E-6 : f32
    %64 = vector.broadcast %cst_37 : f32 to vector<8x1xf32>
    %65 = arith.addf %63, %64 : vector<8x1xf32>
    %66 = math.rsqrt %65 : vector<8x1xf32>
    %67 = vector.broadcast %66 : vector<8x1xf32> to vector<8x128xf32>
    %68 = arith.mulf %58, %67 : vector<8x128xf32>
    %69 = arith.mulf %37, %68 : vector<8x128xf32>
    %70 = arith.addf %69, %45 : vector<8x128xf32>
    %71 = arith.mulf %70, %70 : vector<8x128xf32>
    %72 = arith.mulf %70, %71 : vector<8x128xf32>
    %cst_38 = arith.constant 4.471500e-02 : f32
    %73 = vector.broadcast %cst_38 : f32 to vector<8x128xf32>
    %74 = arith.mulf %73, %72 : vector<8x128xf32>
    %75 = arith.addf %70, %74 : vector<8x128xf32>
    %cst_39 = arith.constant 0.797884583 : f32
    %76 = vector.broadcast %cst_39 : f32 to vector<8x128xf32>
    %77 = arith.mulf %76, %75 : vector<8x128xf32>
    %78 = math.tanh %77 : vector<8x128xf32>
    %cst_40 = arith.constant 1.000000e+00 : f32
    %79 = vector.broadcast %cst_40 : f32 to vector<8x128xf32>
    %80 = arith.addf %79, %78 : vector<8x128xf32>
    %cst_41 = arith.constant 5.000000e-01 : f32
    %81 = vector.broadcast %cst_41 : f32 to vector<8x128xf32>
    %82 = arith.mulf %81, %80 : vector<8x128xf32>
    %83 = arith.mulf %70, %82 : vector<8x128xf32>
    %84 = arith.truncf %83 : vector<8x128xf32> to vector<8x128xbf16>
    %c0_42 = arith.constant 0 : index
    %c0_43 = arith.constant 0 : index
    %85 = vector.load %arg12[%c0_42, %c0_43] : memref<128x128xbf16, #tpu.memory_space<vmem>>, vector<128x128xbf16>
    %cst_44 = arith.constant dense<0.000000e+00> : vector<8x128xf32>
    %86 = tpu.matmul %84, %85, %cst_44 {dimension_numbers = #tpu.dot_dimension_numbers<[1], [0], [0], [1], [0, 0, 1, 1], [], []>} : vector<8x128xbf16>, vector<128x128xbf16>, vector<8x128xf32> -> vector<8x128xf32>
    %c0_45 = arith.constant 0 : index
    %c0_46 = arith.constant 0 : index
    %87 = vector.load %arg13[%c0_45, %c0_46] : memref<1x128xf32, #tpu.memory_space<vmem>>, vector<1x128xf32>
    %88 = vector.broadcast %87 : vector<1x128xf32> to vector<8x128xf32>
    %89 = arith.addf %86, %88 : vector<8x128xf32>
    %90 = arith.mulf %89, %89 : vector<8x128xf32>
    %91 = arith.mulf %89, %90 : vector<8x128xf32>
    %cst_47 = arith.constant 4.471500e-02 : f32
    %92 = vector.broadcast %cst_47 : f32 to vector<8x128xf32>
    %93 = arith.mulf %92, %91 : vector<8x128xf32>
    %94 = arith.addf %89, %93 : vector<8x128xf32>
    %cst_48 = arith.constant 0.797884583 : f32
    %95 = vector.broadcast %cst_48 : f32 to vector<8x128xf32>
    %96 = arith.mulf %95, %94 : vector<8x128xf32>
    %97 = math.tanh %96 : vector<8x128xf32>
    %cst_49 = arith.constant 1.000000e+00 : f32
    %98 = vector.broadcast %cst_49 : f32 to vector<8x128xf32>
    %99 = arith.addf %98, %97 : vector<8x128xf32>
    %cst_50 = arith.constant 5.000000e-01 : f32
    %100 = vector.broadcast %cst_50 : f32 to vector<8x128xf32>
    %101 = arith.mulf %100, %99 : vector<8x128xf32>
    %102 = arith.mulf %89, %101 : vector<8x128xf32>
    %c0_51 = arith.constant 0 : index
    %c0_52 = arith.constant 0 : index
    %103 = vector.load %arg14[%c0_51, %c0_52] : memref<8x128xf32, #tpu.memory_space<vmem>>, vector<8x128xf32>
    tpu.vector_store %arg14[%c0_51, %c0_52], %102 {strides = array<i32>} : memref<8x128xf32, #tpu.memory_space<vmem>>, vector<8x128xf32>,
    return
  }
  func.func @transform_0(%arg0: i32) -> (i32, i32) {
    %c0_i32 = arith.constant 0 : i32
    %c0_i32_0 = arith.constant 0 : i32
    return %arg0, %c0_i32 : i32, i32
  }
  func.func @transform_1(%arg0: i32) -> (i32, i32) {
    %c0_i32 = arith.constant 0 : i32
    %c0_i32_0 = arith.constant 0 : i32
    return %arg0, %c0_i32 : i32, i32
  }
  func.func @transform_2(%arg0: i32) -> (i32, i32) {
    %c0_i32 = arith.constant 0 : i32
    %c0_i32_0 = arith.constant 0 : i32
    return %arg0, %c0_i32 : i32, i32
  }
  func.func @transform_3(%arg0: i32) -> (i32, i32) {
    %c0_i32 = arith.constant 0 : i32
    %c0_i32_0 = arith.constant 0 : i32
    %c0_i32_1 = arith.constant 0 : i32
    return %c0_i32, %c0_i32_0 : i32, i32
  }
  func.func @transform_4(%arg0: i32) -> (i32, i32) {
    %c0_i32 = arith.constant 0 : i32
    %c0_i32_0 = arith.constant 0 : i32
    %c0_i32_1 = arith.constant 0 : i32
    return %c0_i32, %c0_i32_0 : i32, i32
  }
  func.func @transform_5(%arg0: i32) -> (i32, i32) {
    %c0_i32 = arith.constant 0 : i32
    %c0_i32_0 = arith.constant 0 : i32
    %c0_i32_1 = arith.constant 0 : i32
    return %c0_i32, %c0_i32_0 : i32, i32
  }
  func.func @transform_6(%arg0: i32) -> (i32, i32) {
    %c0_i32 = arith.constant 0 : i32
    %c0_i32_0 = arith.constant 0 : i32
    %c0_i32_1 = arith.constant 0 : i32
    return %c0_i32, %c0_i32_0 : i32, i32
  }
  func.func @transform_7(%arg0: i32) -> (i32, i32) {
    %c0_i32 = arith.constant 0 : i32
    %c0_i32_0 = arith.constant 0 : i32
    %c0_i32_1 = arith.constant 0 : i32
    return %c0_i32, %c0_i32_0 : i32, i32
  }
  func.func @transform_8(%arg0: i32) -> (i32, i32) {
    %c0_i32 = arith.constant 0 : i32
    %c0_i32_0 = arith.constant 0 : i32
    %c0_i32_1 = arith.constant 0 : i32
    return %c0_i32, %c0_i32_0 : i32, i32
  }
  func.func @transform_9(%arg0: i32) -> (i32, i32) {
    %c0_i32 = arith.constant 0 : i32
    %c0_i32_0 = arith.constant 0 : i32
    %c0_i32_1 = arith.constant 0 : i32
    return %c0_i32, %c0_i32_0 : i32, i32
  }
  func.func @transform_10(%arg0: i32) -> (i32, i32) {
    %c0_i32 = arith.constant 0 : i32
    %c0_i32_0 = arith.constant 0 : i32
    %c0_i32_1 = arith.constant 0 : i32
    return %c0_i32, %c0_i32_0 : i32, i32
  }
  func.func @transform_11(%arg0: i32) -> (i32, i32) {
    %c0_i32 = arith.constant 0 : i32
    %c0_i32_0 = arith.constant 0 : i32
    %c0_i32_1 = arith.constant 0 : i32
    return %c0_i32, %c0_i32_0 : i32, i32
  }
  func.func @transform_12(%arg0: i32) -> (i32, i32) {
    %c0_i32 = arith.constant 0 : i32
    %c0_i32_0 = arith.constant 0 : i32
    %c0_i32_1 = arith.constant 0 : i32
    return %c0_i32, %c0_i32_0 : i32, i32
  }
  func.func @transform_13(%arg0: i32) -> (i32, i32) {
    %c0_i32 = arith.constant 0 : i32
    %c0_i32_0 = arith.constant 0 : i32
    return %arg0, %c0_i32 : i32, i32
  }
}

</mosaic_0001>

<bundles_post_ra>
// kernel: conditioning_block.1
= control target key start
LH: loop header
LB: loop body
LE: loop exit
PB: predicated region body
PF: predicated region fallthrough
CT: control target
= control target key end

     0   :  { %s1108_s5 = inlined_call_operand.vmem [shape: bf16[128,128], index: 5, kind: input, shape index: {}]   ;;  %s1109_s3 = inlined_call_operand.vmem [shape: bf16[128,128], index: 3, kind: input, shape index: {}]   ;;  %s1110_s1 = inlined_call_operand.vmem [shape: f32[8,128], index: 1, kind: input, shape index: {}]   ;;  %s1111_s0 = inlined_call_operand.vmem [shape: f32[8,128], index: 0, kind: input, shape index: {}]   ;;  %s1112_s9 = inlined_call_operand.vmem [shape: bf16[128,128], index: 9, kind: input, shape index: {}]   ;;  %s1113_s7 = inlined_call_operand.vmem [shape: f32[1,128], index: 7, kind: input, shape index: {}]   ;;  %s1114_s10 = inlined_call_operand.vmem [shape: f32[1,128], index: 10, kind: input, shape index: {}]   ;;  %s1115_s2 = inlined_call_operand.vmem [shape: f32[8,128], index: 2, kind: input, shape index: {}]   ;;  %s1116_s6 = inlined_call_operand.vmem [shape: bf16[128,128], index: 6, kind: input, shape index: {}]   ;;  %s1117_s4 = inlined_call_operand.vmem [shape: bf16[128,128], index: 4, kind: input, shape index: {}]   ;;  %s1118_s8 = inlined_call_operand.vmem [shape: f32[1,128], index: 8, kind: input, shape index: {}]   ;;  %s1119_s12 = inlined_call_operand.vmem [shape: f32[1,128], index: 12, kind: input, shape index: {}]   ;;  %s1120_s11 = inlined_call_operand.vmem [shape: bf16[128,128], index: 11, kind: input, shape index: {}]   ;;  %s1121_s13 = inlined_call_operand.vmem [shape: f32[8,128], index: 13, kind: output, shape index: {}]  }
   0x1   :  { %v808_v0 = vld [vmem:[%s1108_s5 + $0x38] sm:$0xff]  ;;  %v807_v2 = vld [vmem:[%s1108_s5 + $0x30] sm:$0xff]  ;;  %v55_v4 = vld [vmem:[%s1110_s1] sm:$0xff] }
   0x2   :  { %v800_v1 = vld [vmem:[%s1109_s3 + $0x38] sm:$0xff]  ;;  %146 = vmatpush.bf16.msra.mxu0 %v808_v0  ;;  %v799_v3 = vld [vmem:[%s1109_s3 + $0x30] sm:$0xff]  ;;  %v806_v5 = vld [vmem:[%s1108_s5 + $0x28] sm:$0xff]  ;;  %v56_v6 = vmul.f32 %v55_v4, %v55_v4 }
   0x3   :  { %207 = vmatpush.bf16.msra.mxu1 %v800_v1  ;;  %v44_v7 = vld [vmem:[%s1111_s0] sm:$0xff]  ;;  %v798_v8 = vld [vmem:[%s1109_s3 + $0x28] sm:$0xff]  ;;  %v804_v18 = vld [vmem:[%s1108_s5 + $0x18] sm:$0xff] }
   0x4   :  { %v45_v9 = vmul.f32 %v44_v7, %v44_v7  ;;  %v57_v10 = vmul.f32 %v56_v6, %v55_v4  ;;  %v805_v12 = vld [vmem:[%s1108_s5 + $0x20] sm:$0xff]  ;;  %v796_v20 = vld [vmem:[%s1109_s3 + $0x18] sm:$0xff]  ;;  %v803_v22 = vld [vmem:[%s1108_s5 + $0x10] sm:$0xff] }
   0x5   :  { %v797_v14 = vld [vmem:[%s1109_s3 + $0x20] sm:$0xff]  ;;  %v795_v23 = vld [vmem:[%s1109_s3 + $0x10] sm:$0xff]  ;;  %v802_v25 = vld [vmem:[%s1108_s5 + $0x8] sm:$0xff] }
   0x6   :  { %147 = vmatpush.bf16.msra.mxu0 %v807_v2  ;;  %v46_v11 = vmul.f32 %v45_v9, %v44_v7  ;;  %v58_v13 = vmul.f32 0.044715, %v57_v10  ;;  %v794_v28 = vld [vmem:[%s1109_s3 + $0x8] sm:$0xff]  ;;  %v801_v31 = vld [vmem:[%s1108_s5] sm:$0xff]  ;;  %v832_v33 = vld [vmem:[%s1112_s9 + $0x38] sm:$0xff]  ;;  %v858_v9 = vmov 128.0  }
   0x7   :  { %208 = vmatpush.bf16.msra.mxu1 %v799_v3  ;;  %v793_v35 = vld [vmem:[%s1109_s3] sm:$0xff]  ;;  %v831_v39 = vld [vmem:[%s1112_s9 + $0x30] sm:$0xff]  ;;  %v830_v40 = vld [vmem:[%s1112_s9 + $0x28] sm:$0xff] }
   0x8   :  { %v47_v15 = vmul.f32 0.044715, %v46_v11  ;;  %v59_v16 = vadd.f32 %v58_v13, %v55_v4  ;;  %v829_v41 = vld [vmem:[%s1112_s9 + $0x20] sm:$0xff]  ;;  %v828_v42 = vld [vmem:[%s1112_s9 + $0x18] sm:$0xff]  ;;  %v827_v43 = vld [vmem:[%s1112_s9 + $0x10] sm:$0xff] }
   0x9   :  { %v826_v44 = vld [vmem:[%s1112_s9 + $0x8] sm:$0xff]  ;;  %v825_v45 = vld [vmem:[%s1112_s9] sm:$0xff]  ;;  %v824_v51 = vld [vmem:[%s1116_s6 + $0x38] sm:$0xff] }
   0xa   :  { %148 = vmatpush.bf16.msra.mxu0 %v806_v5  ;;  %v48_v17 = vadd.f32 %v47_v15, %v44_v7  ;;  %v60_v19 = vmul.f32 0.7978846, %v59_v16  ;;  %v384_v46 = vld [vmem:[%s1115_s2] sm:$0xff]  ;;  %v816_v52 = vld [vmem:[%s1117_s4 + $0x38] sm:$0xff]  ;;  %305 = vmatpush.bf16.msra.mxu2 %v824_v51  ;;  %v823_v53 = vld [vmem:[%s1116_s6 + $0x30] sm:$0xff] }
   0xb   :  { %209 = vmatpush.bf16.msra.mxu1 %v798_v8  ;;  %v385_v47 = vpack.c.bf16 %v384_v46, %v384_v46  ;;  %366 = vmatpush.bf16.msra.mxu3 %v816_v52  ;;  %v815_v54 = vld [vmem:[%s1117_s4 + $0x30] sm:$0xff]  ;;  %v822_v57 = vld [vmem:[%s1116_s6 + $0x28] sm:$0xff]  ;;  %v821_v59 = vld [vmem:[%s1116_s6 + $0x20] sm:$0xff] }
   0xc   :  { %v49_v21 = vmul.f32 0.7978846, %v48_v17  ;;  %846 = vtanh.f32 %v60_v19  ;;  %v814_v58 = vld [vmem:[%s1117_s4 + $0x28] sm:$0xff]  ;;  %v813_v60 = vld [vmem:[%s1117_s4 + $0x20] sm:$0xff]  ;;  %v820_v61 = vld [vmem:[%s1116_s6 + $0x18] sm:$0xff] }
   0xd   :  { %v812_v62 = vld [vmem:[%s1117_s4 + $0x18] sm:$0xff]  ;;  %v819_v63 = vld [vmem:[%s1116_s6 + $0x10] sm:$0xff]  ;;  %v843_v1 = vld [vmem:[%s1114_s10] ss:$0 sm:$0xff] }
   0xe   :  { %149 = vmatpush.bf16.msra.mxu0 %v805_v12  ;;  %848 = vtanh.f32 %v49_v21  ;;  %306 = vmatpush.bf16.msra.mxu2 %v823_v53  ;;  %v811_v0 = vld [vmem:[%s1117_s4 + $0x10] sm:$0xff]  ;;  %v818_v2 = vld [vmem:[%s1116_s6 + $0x8] sm:$0xff]  ;;  %v809_v8 = vld [vmem:[%s1117_s4] sm:$0xff] }
   0xf   :  { %210 = vmatpush.bf16.msra.mxu1 %v797_v14  ;;  %367 = vmatpush.bf16.msra.mxu3 %v815_v54  ;;  %v810_v3 = vld [vmem:[%s1117_s4 + $0x8] sm:$0xff]  ;;  %850 = vrcp.f32 %v858_v9 }
  0x12   :  { %150 = vmatpush.bf16.msra.mxu0 %v804_v18  ;;  %v847_v24 = vpop.eup %846  ;;  %307 = vmatpush.bf16.msra.mxu2 %v822_v57 }
  0x13   :  { %211 = vmatpush.bf16.msra.mxu1 %v796_v20  ;;  %v62_v27 = vadd.f32 1.0, %v847_v24  ;;  %368 = vmatpush.bf16.msra.mxu3 %v814_v58 }
  0x14   :  { %v849_v26 = vpop.eup %848 }
  0x15   :  { %v51_v29 = vadd.f32 1.0, %v849_v26  ;;  %v63_v30 = vmul.f32 0.5, %v62_v27  ;;  %v851_v10 = vpop.eup %850  ;;  %v838_v26 = vld [vmem:[%s1120_s11 + $0x28] sm:$0xff]  ;;  %v837_v27 = vld [vmem:[%s1120_s11 + $0x20] sm:$0xff] }
  0x16   :  { %151 = vmatpush.bf16.msra.mxu0 %v803_v22  ;;  %308 = vmatpush.bf16.msra.mxu2 %v821_v59  ;;  %v470_v11 = vmul.f32 128.0, %v851_v10  ;;  %vm474_vm0 = vweird.f32 %v851_v10  ;;  %v840_v22 = vld [vmem:[%s1120_s11 + $0x38] sm:$0xff] }
  0x17   :  { %212 = vmatpush.bf16.msra.mxu1 %v795_v23  ;;  %v52_v32 = vmul.f32 0.5, %v51_v29  ;;  %v64_v34 = vmul.f32 %v63_v30, %v55_v4  ;;  %369 = vmatpush.bf16.msra.mxu3 %v813_v60 }
  0x18   :  { %v471_v12 = vsub.f32 1.0, %v470_v11 }
  0x19   :  { %v53_v36 = vmul.f32 %v52_v32, %v44_v7  ;;  %v986_v37 = vpack.c.bf16 %v64_v34, %v64_v34  ;;  %v817_v7 = vld [vmem:[%s1116_s6] sm:$0xff]  ;;  %v835_v32 = vld [vmem:[%s1120_s11 + $0x10] sm:$0xff]  ;;  %v834_v34 = vld [vmem:[%s1120_s11 + $0x8] sm:$0xff] }
  0x1a   :  { %152 = vmatpush.bf16.msra.mxu0 %v802_v25  ;;  %309 = vmatpush.bf16.msra.mxu2 %v820_v61  ;;  %v472_v13 = vmul.f32 %v851_v10, %v471_v12  ;;  %v839_v25 = vld [vmem:[%s1120_s11 + $0x30] sm:$0xff] }
  0x1b   :  { %213 = vmatpush.bf16.msra.mxu1 %v794_v28  ;;  %v988_v38 = vpack.c.bf16 %v53_v36, %v53_v36  ;;  %370 = vmatpush.bf16.msra.mxu3 %v812_v62 }
  0x1c   :  { %v473_v14 = vadd.f32 %v851_v10, %v472_v13 }
  0x1e   :  { %153 = vmatpush.bf16.msra.mxu0 %v801_v31  ;;  %310 = vmatpush.bf16.msra.mxu2 %v819_v63  ;;  %v475_v15 = vsel %vm474_vm0, %v851_v10, %v473_v14  ;;  %v836_v31 = vld [vmem:[%s1120_s11 + $0x18] sm:$0xff] }
  0x1f   :  { %214 = vmatpush.bf16.msra.mxu1 %v793_v35  ;;  %371 = vmatpush.bf16.msra.mxu3 %v811_v0 }
  0x21   :  { %154 = vmatmul.bf16.vlgmr.msra.gmra.mxu0 %v986_v37 }
  0x22   :  { %454 = vmatpush.bf16.msrb.mxu0 %v832_v33  ;;  %215 = vmatmul.bf16.vlgmr.msra.gmra.mxu1 %v988_v38 }
  0x23   :  { %311 = vmatpush.bf16.msra.mxu2 %v818_v2  ;;  %372 = vmatpush.bf16.msra.mxu3 %v810_v3 }
  0x24   :  { %574 = vmatpush.bf16.msrb.mxu1 %v840_v22 }
  0x26   :  { %455 = vmatpush.bf16.msrb.mxu0 %v831_v39 }
  0x27   :  { %312 = vmatpush.bf16.msra.mxu2 %v817_v7  ;;  %373 = vmatpush.bf16.msra.mxu3 %v809_v8 }
  0x28   :  { %575 = vmatpush.bf16.msrb.mxu1 %v839_v25 }
  0x2a   :  { %456 = vmatpush.bf16.msrb.mxu0 %v830_v40  ;;  %313 = vmatmul.bf16.vlgmr.msra.gmra.mxu2 %v986_v37  ;;  %v833_v37 = vld [vmem:[%s1120_s11] sm:$0xff] }
  0x2b   :  { %374 = vmatmul.bf16.vlgmr.msra.gmra.mxu3 %v988_v38  ;;  %v842_v40 = vld [vmem:[%s1113_s7] ss:$0 sm:$0xff] }
  0x2c   :  { %576 = vmatpush.bf16.msrb.mxu1 %v838_v26 }
  0x2e   :  { %457 = vmatpush.bf16.msrb.mxu0 %v829_v41 }
  0x30   :  { %577 = vmatpush.bf16.msrb.mxu1 %v837_v27 }
  0x32   :  { %458 = vmatpush.bf16.msrb.mxu0 %v828_v42  ;;  %v844_v42 = vld [vmem:[%s1118_s8] ss:$0 sm:$0xff] }
  0x34   :  { %578 = vmatpush.bf16.msrb.mxu1 %v836_v31 }
  0x36   :  { %459 = vmatpush.bf16.msrb.mxu0 %v827_v43 }
  0x38   :  { %579 = vmatpush.bf16.msrb.mxu1 %v835_v32 }
  0x3a   :  { %460 = vmatpush.bf16.msrb.mxu0 %v826_v44 }
  0x3c   :  { %580 = vmatpush.bf16.msrb.mxu1 %v834_v34 }
  0x3e   :  { %461 = vmatpush.bf16.msrb.mxu0 %v825_v45 }
  0x40   :  { %581 = vmatpush.bf16.msrb.mxu1 %v833_v37 }
  0x41   :  { %462 = vmatmul.bf16.vlgmr.msrb.gmra.mxu0 %v385_v47 }
  0x9e   :  { %v155_v48 = vpop.f32.mrf.mxu0 }
  0x9f   :  { %v216_v49 = vpop.f32.mrf.mxu1 }
  0xa0   :  { %v1016_v50 = vadd.f32 %v216_v49, %v155_v48 }
  0xa2   :  { %v224_v45 = vadd.f32 %v842_v40, %v1016_v50  ;;  %v845_v50 = vld [vmem:[%s1119_s12] ss:$0 sm:$0xff] }
  0xa6   :  { %v157_v55 = vpop.f32.mrf.mxu0 }
  0xa7   :  { %v218_v56 = vpop.f32.mrf.mxu1 }
  0xad   :  { %v314_v20 = vpop.f32.mrf.mxu2 }
  0xae   :  { %v375_v21 = vpop.f32.mrf.mxu3 }
  0xaf   :  { %v376_v41 = vadd.f32 %v375_v21, %v314_v20 }
  0xb1   :  { %v383_v46 = vadd.f32 %v844_v42, %v376_v41 }
  0xb5   :  { %v316_v23 = vpop.f32.mrf.mxu2 }
  0xb6   :  { %v377_v24 = vpop.f32.mrf.mxu3 }
  0xbe   :  { %v463_v4 = vpop.f32.mrf.mxu0 }
  0xbf   :  { %v464_v5 = vadd.f32 %v843_v1, %v463_v4 }
  0xc1   :  { %467 = vadd.xlane.f32.xlu0 %v464_v5 }
  0xc6   :  { %v465_v6 = vpop.f32.mrf.mxu0 }
 0x134   :  { %v468_v16 = vpop.xlane.xlu0 %467 }
 0x135   :  { %v476_v17 = vmul.f32 %v475_v15, %v468_v16 }
 0x137   :  { %v477_v18 = vsub.f32 %v464_v5, %v476_v17 }
 0x139   :  { %v478_v19 = vmul.f32 %v477_v18, %v477_v18 }
 0x13b   :  { %479 = vadd.xlane.f32.xlu0 %v478_v19 }
 0x1ae   :  { %v480_v28 = vpop.xlane.xlu0 %479 }
 0x1af   :  { %v481_v29 = vmul.f32 %v480_v28, %v475_v15 }
 0x1b1   :  { %v482_v30 = vadd.f32 1e-05, %v481_v29 }
 0x1b3   :  { %852 = vrsqrt.f32 %v482_v30  ;;  %vm489_vm2 = vweird.f32 %v482_v30 }
 0x1b9   :  { %v853_v33 = vpop.eup %852 }
 0x1ba   :  { %v484_v35 = vmul.f32 %v853_v33, %v482_v30  ;;  %vm490_vm1 = vweird.f32 %v853_v33 }
 0x1bb   :  { %vm491_vm3 = vmor %vm489_vm2, %vm490_vm1 }
 0x1bc   :  { %v485_v36 = vmul.f32 %v853_v33, %v484_v35 }
 0x1be   :  { %v486_v38 = vmul.f32 0.5, %v485_v36 }
 0x1c0   :  { %v487_v39 = vsub.f32 1.5, %v486_v38 }
 0x1c2   :  { %v488_v43 = vmul.f32 %v853_v33, %v487_v39 }
 0x1c4   :  { %v492_v44 = vsel %vm491_vm3, %v853_v33, %v488_v43 }
 0x1c5   :  { %v493_v47 = vmul.f32 %v492_v44, %v477_v18 }
 0x1c7   :  { %v494_v48 = vmul.f32 %v493_v47, %v224_v45 }
 0x1c9   :  { %v495_v49 = vadd.f32 %v494_v48, %v383_v46 }
 0x1cb   :  { %v496_v51 = vmul.f32 %v495_v49, %v495_v49 }
 0x1cd   :  { %v497_v52 = vmul.f32 %v496_v51, %v495_v49 }
 0x1cf   :  { %v498_v53 = vmul.f32 0.044715, %v497_v52 }
 0x1d1   :  { %v499_v54 = vadd.f32 %v498_v53, %v495_v49 }
 0x1d3   :  { %v500_v55 = vmul.f32 0.7978846, %v499_v54 }
 0x1d5   :  { %854 = vtanh.f32 %v500_v55 }
 0x1db   :  { %v855_v56 = vpop.eup %854 }
 0x1dc   :  { %v502_v57 = vadd.f32 1.0, %v855_v56 }
 0x1de   :  { %v503_v58 = vmul.f32 0.5, %v502_v57 }
 0x1e0   :  { %v504_v59 = vmul.f32 %v503_v58, %v495_v49 }
 0x1e2   :  { %v505_v60 = vpack.c.bf16 %v504_v59, %v504_v59 }
 0x1e4   :  { %582 = vmatmul.bf16.vlgmr.msrb.gmra.mxu1 %v505_v60 }
 0x261   :  { %v583_v61 = vpop.f32.mrf.mxu1 }
 0x262   :  { %v584_v62 = vadd.f32 %v845_v50, %v583_v61 }
 0x264   :  { %v587_v63 = vmul.f32 %v584_v62, %v584_v62 }
 0x266   :  { %v588_v0 = vmul.f32 %v587_v63, %v584_v62 }
 0x268   :  { %v589_v1 = vmul.f32 0.044715, %v588_v0 }
 0x269   :  { %v585_v2 = vpop.f32.mrf.mxu1 }
 0x26a   :  { %v590_v3 = vadd.f32 %v589_v1, %v584_v62 }
 0x26c   :  { %v591_v4 = vmul.f32 0.7978846, %v590_v3 }
 0x26e   :  { %856 = vtanh.f32 %v591_v4 }
 0x274   :  { %v857_v5 = vpop.eup %856 }
 0x275   :  { %v593_v6 = vadd.f32 1.0, %v857_v5 }
 0x277   :  { %v594_v7 = vmul.f32 0.5, %v593_v6 }
 0x279   :  { %v595_v8 = vmul.f32 %v594_v7, %v584_v62 }
 0x27b   :  { %596 = vst [vmem:[%s1121_s13] sm:$0xff] %v595_v8 }

</bundles_post_ra>
